<compile_context>
chip_gen: v6e
topology: v6e:2x2x1
jax: 0.10.0
libtpu: 0.0.40
codegen_flags: <defaults>
</compile_context>

<pallas_src>
import jax
import jax.numpy as jnp
from jax import lax
from jax.experimental import pallas as pl
from jax.experimental.pallas import tpu as pltpu


# ----------------------------------------------------------------------------
# Sequence kernel: all T steps in one grid-less pallas_call.
# ----------------------------------------------------------------------------
def rnn_seq_kernel(xs_ref, h0_ref, w_xh_ref, w_xo_ref, w_hh_ref, w_ho_ref,
                   b_h_ref, b_o_ref,                 # inputs
                   logp_ref, hT_ref,                 # outputs
                   px_h_scr, hprev_scr):             # scratch
    T, B, I = xs_ref.shape
    H = w_hh_ref.shape[0]
    O = w_ho_ref.shape[1]

    # ---- time-parallel x-projections: one GEMM each over all T*B rows ------
    x_flat = xs_ref[...].reshape(T * B, I)
    px_h_scr[...] = (
        jnp.dot(x_flat, w_xh_ref[...], preferred_element_type=jnp.float32)
        + b_h_ref[...]
    ).reshape(T, B, H)
    px_o = (
        jnp.dot(x_flat, w_xo_ref[...], preferred_element_type=jnp.float32)
        + b_o_ref[...]
    )                                                       # (T*B, O)

    # ---- serial recurrence (the only un-parallelizable part) ---------------
    w_hh = w_hh_ref[...]

    def step(t, h_prev):
        # The cell uses h_{t-1} for BOTH the hidden update and the logits
        # (matching the PyTorch module), so stash h_{t-1} for the batched
        # logits GEMM below.
        hprev_scr[t] = h_prev
        h_new = (jnp.dot(h_prev, w_hh, preferred_element_type=jnp.float32)
                 + px_h_scr[t])
        return h_new

    h_final = lax.fori_loop(0, T, step, h0_ref[...], unroll=True)
    hT_ref[...] = h_final

    # ---- time-parallel logits GEMM + one batched log-softmax ---------------
    hprev_flat = hprev_scr[...].reshape(T * B, H)
    logits = (jnp.dot(hprev_flat, w_ho_ref[...],
                      preferred_element_type=jnp.float32)
              + px_o)                                       # (T*B, O)
    m = jnp.max(logits, axis=1, keepdims=True)              # XLU
    shifted = logits - m
    lse = jnp.log(jnp.sum(jnp.exp(shifted), axis=1, keepdims=True))
    logp_ref[...] = (shifted - lse).reshape(T, B, O)


def rnn_forward_sequence(xs, hid0, packed_params):
    """xs: (T, B, I). Returns (log_probs (T, B, O), final hidden (B, H))."""
    w_xh, w_xo, w_hh, w_ho, b_h, b_o = packed_params
    T, B, I = xs.shape
    H = w_hh.shape[0]
    O = w_ho.shape[1]

    vmem = pl.BlockSpec(memory_space=pltpu.MemorySpace.VMEM)
    log_probs, hid_T = pl.pallas_call(
        rnn_seq_kernel,
        out_shape=(jax.ShapeDtypeStruct((T, B, O), jnp.float32),
                   jax.ShapeDtypeStruct((B, H), jnp.float32)),
        in_specs=[vmem] * 8,
        out_specs=(vmem, vmem),
        scratch_shapes=[pltpu.VMEM((T, B, H), jnp.float32),   # px_h
                        pltpu.VMEM((T, B, H), jnp.float32)],  # h_{t-1} stash
    )(xs, hid0, w_xh, w_xo, w_hh, w_ho, b_h, b_o)
    return log_probs, hid_T


def rnn_forward(inp, hid, packed_params):
    """Single step (== module.forward). Returns (log_probs (B,O), hid_new (B,H))."""
    log_probs, hid_new = rnn_forward_sequence(inp[None], hid, packed_params)
    return log_probs[0], hid_new


# ----------------------------------------------------------------------------
# Parameter packing (done once, outside the forward calls).
# ----------------------------------------------------------------------------
def pack_rnn_params(w_i2h, b_i2h, w_i2o, b_i2o):
    """PyTorch nn.Linear layout -> split, MXU-friendly layout.

    w_i2h: (H, I+H), w_i2o: (O, I+H)
      ->  W_xh (I, H), W_xo (I, O), W_hh (H, H), W_ho (H, O), b_h (1,H), b_o (1,O)
    """
    H = w_i2h.shape[0]
    I = w_i2h.shape[1] - H
    w_i2h_t = w_i2h.T            # (I+H, H)
    w_i2o_t = w_i2o.T            # (I+H, O)
    w_xh = w_i2h_t[:I, :]
    w_hh = w_i2h_t[I:, :]
    w_xo = w_i2o_t[:I, :]
    w_ho = w_i2o_t[I:, :]
    b_h = b_i2h.reshape(1, -1)
    b_o = b_i2o.reshape(1, -1)
    return w_xh, w_xo, w_hh, w_ho, b_h, b_o


def init_linear_params(key, in_features, out_features):
    """Deterministic nn.Linear-style init: U(-1/sqrt(fan_in), 1/sqrt(fan_in))."""
    kw, kb = jax.random.split(key)
    bound = 1.0 / jnp.sqrt(jnp.float32(in_features))
    w = jax.random.uniform(kw, (out_features, in_features), jnp.float32,
                           minval=-bound, maxval=bound)
    b = jax.random.uniform(kb, (out_features,), jnp.float32,
                           minval=-bound, maxval=bound)
    return w, b


if __name__ == "__main__":
    batch = 2
    input_size = 16
    hidden_size = 32
    output_size = 8
    seq_len = 8

    key = jax.random.PRNGKey(0)
    k_in, k_seq, k_i2h, k_i2o = jax.random.split(key, 4)

    inp = jax.random.normal(k_in, (batch, input_size), jnp.float32)
    hid0 = jnp.zeros((batch, hidden_size), jnp.float32)   # init_hidden-style

    w_i2h, b_i2h = init_linear_params(k_i2h, input_size + hidden_size, hidden_size)
    w_i2o, b_i2o = init_linear_params(k_i2o, input_size + hidden_size, output_size)
    packed = pack_rnn_params(w_i2h, b_i2h, w_i2o, b_i2o)

    # ---- single step (matches module.forward) ----
    out, hid_new = rnn_forward(inp, hid0, packed)
    jax.block_until_ready((out, hid_new))

    comb = jnp.concatenate([inp, hid0], axis=1)
    hid_ref = comb @ w_i2h.T + b_i2h
    out_ref = jax.nn.log_softmax(comb @ w_i2o.T + b_i2o, axis=1)
    assert jnp.allclose(out, out_ref, atol=1e-5), "single-step log-softmax mismatch"
    assert jnp.allclose(hid_new, hid_ref, atol=1e-5), "single-step hidden mismatch"

    # ---- full sequence inside one pallas_call ----
    xs = jax.random.normal(k_seq, (seq_len, batch, input_size), jnp.float32)
    log_probs_seq, hid_T = rnn_forward_sequence(xs, hid0, packed)
    jax.block_until_ready((log_probs_seq, hid_T))

    h = hid0
    ref_outs = []
    for t in range(seq_len):
        c = jnp.concatenate([xs[t], h], axis=1)
        ref_outs.append(jax.nn.log_softmax(c @ w_i2o.T + b_i2o, axis=1))
        h = c @ w_i2h.T + b_i2h
    ref_outs = jnp.stack(ref_outs)
    assert jnp.allclose(log_probs_seq, ref_outs, atol=1e-4), "sequence output mismatch"
    assert jnp.allclose(hid_T, h, atol=1e-4), "sequence final hidden mismatch"

    print("KERNEL_OK")
</pallas_src>

<mosaic_0001>
module attributes {stable_mosaic.version = 11 : i64} {
  func.func @rnn_seq_kernel(%arg0: memref<1x2x16xf32, #tpu.memory_space<vmem>>, %arg1: memref<2x32xf32, #tpu.memory_space<vmem>>, %arg2: memref<16x32xf32, #tpu.memory_space<vmem>>, %arg3: memref<16x8xf32, #tpu.memory_space<vmem>>, %arg4: memref<32x32xf32, #tpu.memory_space<vmem>>, %arg5: memref<32x8xf32, #tpu.memory_space<vmem>>, %arg6: memref<1x32xf32, #tpu.memory_space<vmem>>, %arg7: memref<1x8xf32, #tpu.memory_space<vmem>>, %arg8: memref<1x2x8xf32, #tpu.memory_space<vmem>>, %arg9: memref<2x32xf32, #tpu.memory_space<vmem>>, %arg10: memref<1x2x32xf32, #tpu.memory_space<vmem>>, %arg11: memref<1x2x32xf32, #tpu.memory_space<vmem>>) attributes {dimension_semantics = [], scalar_prefetch = 0 : i64, scratch_operands = 2 : i64, tpu.core_type = #tpu.core_type<tc>} {
    %c0 = arith.constant 0 : index
    %c0_0 = arith.constant 0 : index
    %c0_1 = arith.constant 0 : index
    %0 = vector.load %arg0[%c0, %c0_0, %c0_1] : memref<1x2x16xf32, #tpu.memory_space<vmem>>, vector<1x2x16xf32>
    %1 = vector.shape_cast %0 : vector<1x2x16xf32> to vector<2x16xf32>
    %c0_2 = arith.constant 0 : index
    %c0_3 = arith.constant 0 : index
    %2 = vector.load %arg2[%c0_2, %c0_3] : memref<16x32xf32, #tpu.memory_space<vmem>>, vector<16x32xf32>
    %cst = arith.constant dense<0.000000e+00> : vector<2x32xf32>
    %3 = tpu.matmul %1, %2, %cst {dimension_numbers = #tpu.dot_dimension_numbers<[1], [0], [0], [1], [0, 0, 1, 1], [], []>} : vector<2x16xf32>, vector<16x32xf32>, vector<2x32xf32> -> vector<2x32xf32>
    %c0_4 = arith.constant 0 : index
    %c0_5 = arith.constant 0 : index
    %4 = vector.load %arg6[%c0_4, %c0_5] : memref<1x32xf32, #tpu.memory_space<vmem>>, vector<1x32xf32>
    %5 = vector.broadcast %4 : vector<1x32xf32> to vector<2x32xf32>
    %6 = arith.addf %3, %5 : vector<2x32xf32>
    %7 = vector.shape_cast %6 : vector<2x32xf32> to vector<1x2x32xf32>
    %c0_6 = arith.constant 0 : index
    %c0_7 = arith.constant 0 : index
    %c0_8 = arith.constant 0 : index
    %8 = vector.load %arg10[%c0_6, %c0_7, %c0_8] : memref<1x2x32xf32, #tpu.memory_space<vmem>>, vector<1x2x32xf32>
    tpu.vector_store %arg10[%c0_6, %c0_7, %c0_8], %7 {strides = array<i32>} : memref<1x2x32xf32, #tpu.memory_space<vmem>>, vector<1x2x32xf32>,
    %c0_9 = arith.constant 0 : index
    %c0_10 = arith.constant 0 : index
    %9 = vector.load %arg3[%c0_9, %c0_10] : memref<16x8xf32, #tpu.memory_space<vmem>>, vector<16x8xf32>
    %cst_11 = arith.constant dense<0.000000e+00> : vector<2x8xf32>
    %10 = tpu.matmul %1, %9, %cst_11 {dimension_numbers = #tpu.dot_dimension_numbers<[1], [0], [0], [1], [0, 0, 1, 1], [], []>} : vector<2x16xf32>, vector<16x8xf32>, vector<2x8xf32> -> vector<2x8xf32>
    %c0_12 = arith.constant 0 : index
    %c0_13 = arith.constant 0 : index
    %11 = vector.load %arg7[%c0_12, %c0_13] : memref<1x8xf32, #tpu.memory_space<vmem>>, vector<1x8xf32>
    %12 = vector.broadcast %11 : vector<1x8xf32> to vector<2x8xf32>
    %13 = arith.addf %10, %12 : vector<2x8xf32>
    %c0_14 = arith.constant 0 : index
    %c0_15 = arith.constant 0 : index
    %14 = vector.load %arg4[%c0_14, %c0_15] : memref<32x32xf32, #tpu.memory_space<vmem>>, vector<32x32xf32>
    %c0_16 = arith.constant 0 : index
    %c0_17 = arith.constant 0 : index
    %15 = vector.load %arg1[%c0_16, %c0_17] : memref<2x32xf32, #tpu.memory_space<vmem>>, vector<2x32xf32>
    %c0_i32 = arith.constant 0 : i32
    %16 = arith.index_cast %c0_i32 : i32 to index
    %c0_18 = arith.constant 0 : index
    %c0_19 = arith.constant 0 : index
    %17 = vector.load %arg11[%16, %c0_18, %c0_19] : memref<1x2x32xf32, #tpu.memory_space<vmem>>, vector<1x2x32xf32>
    %18 = vector.shape_cast %17 : vector<1x2x32xf32> to vector<2x32xf32>
    %19 = vector.shape_cast %15 : vector<2x32xf32> to vector<1x2x32xf32>
    tpu.vector_store %arg11[%16, %c0_18, %c0_19], %19 {strides = array<i32>} : memref<1x2x32xf32, #tpu.memory_space<vmem>>, vector<1x2x32xf32>,
    %cst_20 = arith.constant dense<0.000000e+00> : vector<2x32xf32>
    %20 = tpu.matmul %15, %14, %cst_20 {dimension_numbers = #tpu.dot_dimension_numbers<[1], [0], [0], [1], [0, 0, 1, 1], [], []>} : vector<2x32xf32>, vector<32x32xf32>, vector<2x32xf32> -> vector<2x32xf32>
    %21 = arith.index_cast %c0_i32 : i32 to index
    %c0_21 = arith.constant 0 : index
    %c0_22 = arith.constant 0 : index
    %22 = vector.load %arg10[%21, %c0_21, %c0_22] : memref<1x2x32xf32, #tpu.memory_space<vmem>>, vector<1x2x32xf32>
    %23 = vector.shape_cast %22 : vector<1x2x32xf32> to vector<2x32xf32>
    %24 = arith.addf %20, %23 : vector<2x32xf32>
    %c1_i32 = arith.constant 1 : i32
    %c0_23 = arith.constant 0 : index
    %c0_24 = arith.constant 0 : index
    %25 = vector.load %arg9[%c0_23, %c0_24] : memref<2x32xf32, #tpu.memory_space<vmem>>, vector<2x32xf32>
    tpu.vector_store %arg9[%c0_23, %c0_24], %24 {strides = array<i32>} : memref<2x32xf32, #tpu.memory_space<vmem>>, vector<2x32xf32>,
    %c0_25 = arith.constant 0 : index
    %c0_26 = arith.constant 0 : index
    %c0_27 = arith.constant 0 : index
    %26 = vector.load %arg11[%c0_25, %c0_26, %c0_27] : memref<1x2x32xf32, #tpu.memory_space<vmem>>, vector<1x2x32xf32>
    %27 = vector.shape_cast %26 : vector<1x2x32xf32> to vector<2x32xf32>
    %c0_28 = arith.constant 0 : index
    %c0_29 = arith.constant 0 : index
    %28 = vector.load %arg5[%c0_28, %c0_29] : memref<32x8xf32, #tpu.memory_space<vmem>>, vector<32x8xf32>
    %cst_30 = arith.constant dense<0.000000e+00> : vector<2x8xf32>
    %29 = tpu.matmul %27, %28, %cst_30 {dimension_numbers = #tpu.dot_dimension_numbers<[1], [0], [0], [1], [0, 0, 1, 1], [], []>} : vector<2x32xf32>, vector<32x8xf32>, vector<2x8xf32> -> vector<2x8xf32>
    %30 = arith.addf %29, %13 : vector<2x8xf32>
    %cst_31 = arith.constant dense<0xFF800000> : vector<2xf32>
    %31 = vector.multi_reduction <maximumf>, %30, %cst_31 [1] : vector<2x8xf32> to vector<2xf32>
    %32 = vector.shape_cast %31 : vector<2xf32> to vector<2x1xf32>
    %33 = vector.broadcast %32 : vector<2x1xf32> to vector<2x8xf32>
    %34 = arith.subf %30, %33 : vector<2x8xf32>
    %35 = math.exp %34 : vector<2x8xf32>
    %cst_32 = arith.constant dense<0.000000e+00> : vector<2xf32>
    %36 = vector.multi_reduction <add>, %35, %cst_32 [1] : vector<2x8xf32> to vector<2xf32>
    %37 = vector.shape_cast %36 : vector<2xf32> to vector<2x1xf32>
    %38 = math.log %37 : vector<2x1xf32>
    %39 = vector.broadcast %38 : vector<2x1xf32> to vector<2x8xf32>
    %40 = arith.subf %34, %39 : vector<2x8xf32>
    %41 = vector.shape_cast %40 : vector<2x8xf32> to vector<1x2x8xf32>
    %c0_33 = arith.constant 0 : index
    %c0_34 = arith.constant 0 : index
    %c0_35 = arith.constant 0 : index
    %42 = vector.load %arg8[%c0_33, %c0_34, %c0_35] : memref<1x2x8xf32, #tpu.memory_space<vmem>>, vector<1x2x8xf32>
    tpu.vector_store %arg8[%c0_33, %c0_34, %c0_35], %41 {strides = array<i32>} : memref<1x2x8xf32, #tpu.memory_space<vmem>>, vector<1x2x8xf32>,
    return
  }
}

</mosaic_0001>

<bundles_post_ra>
// kernel: tpu_custom_call.1
= control target key start
LH: loop header
LB: loop body
LE: loop exit
PB: predicated region body
PF: predicated region fallthrough
CT: control target
= control target key end

     0   :  { %15 = vsyncpa [#allocation5], 0  ;;  %v510_v1 = vmov 0.0   ;;  %vm511_vm0 = vmmov 0   ;;  %vm117_vm1 = vcmask 254976   ;;  %vm43_vm2 = vcmask 130048   ;;  %s632_s0 = inlined_call_operand.vmem [shape: f32[1,2,16], index: 0, kind: input, shape index: {}]   ;;  %s633_s1 = inlined_call_operand.vmem [shape: f32[2,32], index: 1, kind: input, shape index: {}]   ;;  %s634_s2 = inlined_call_operand.vmem [shape: f32[16,32], index: 2, kind: input, shape index: {}]   ;;  %s635_s3 = inlined_call_operand.vmem [shape: f32[16,8], index: 3, kind: input, shape index: {}]   ;;  %s636_s4 = inlined_call_operand.vmem [shape: f32[32,32], index: 4, kind: input, shape index: {}]   ;;  %s637_s5 = inlined_call_operand.vmem [shape: f32[32,8], index: 5, kind: input, shape index: {}]   ;;  %s638_s6 = inlined_call_operand.vmem [shape: f32[1,32], index: 6, kind: input, shape index: {}]   ;;  %s639_s7 = inlined_call_operand.vmem [shape: f32[1,8], index: 7, kind: input, shape index: {}]   ;;  %s640_s8 = inlined_call_operand.hbm [shape: f32[1,2,8], index: 8, kind: output, shape index: {0}]   ;;  %s641_s9 = inlined_call_operand.hbm [shape: f32[2,32], index: 9, kind: output, shape index: {1}]  }
   0x1   :  { %v120_v0 = vld [vmem:[%s635_s3 + $0x8] sm:$0xff]  ;;  %429 = vmatprep.subr.mxu1 %v510_v1  ;;  %v119_v2 = vld [vmem:[%s635_s3] sm:$0xff]  ;;  %433 = vmatprep.mubr.msk.f32.mxu1 %vm511_vm0, %v510_v1  ;;  %v284_v5 = vld [vmem:[%s637_s5 + $0x18] sm:$0xff] }
   0x2   :  { %430 = vmatpush3.msra.mxu1 %v120_v0  ;;  %v33_v3 = vld [vmem:[%s632_s0] sm:$0x3]  ;;  %422 = vmatprep.subr.mxu0 %v510_v1 }
   0x3   :  { %v202_v4 = vld [vmem:[%s633_s1] sm:$0x3]  ;;  %431 = vmatprep.subr.mxu1 %v510_v1  ;;  %426 = vmatprep.mubr.msk.f32.mxu0 %vm511_vm0, %v510_v1 }
   0x4   :  { %203 = vst.msk [vmem:[#allocation3] sm:$0x3] %vm117_vm1, %v202_v4 }
   0x5   :  { %16 = vsyncpa [#allocation7], 0  ;;  %432 = vmatpush3.msra.mxu1 %v119_v2  ;;  %v283_v6 = vld [vmem:[%s637_s5 + $0x10] sm:$0xff]  ;;  %v282_v7 = vld [vmem:[%s637_s5 + $0x8] sm:$0xff]  ;;  %vm205_vm3 = vcmask 261120   ;;  %vm358_vm4 = vcmask 58368  }
   0x6   :  { %434 = vmatmul.mubr.msk.f32.vlgmr.msra.gmra.mxu1 %vm43_vm2, %v33_v3  ;;  %447 = vmatprep.subr.mxu1 %v510_v1  ;;  %v281_v8 = vld [vmem:[%s637_s5] sm:$0xff]  ;;  %v35_v10 = vld [vmem:[%s634_s2 + $0x8] sm:$0xff]  ;;  %v201_v12 = vld [vmem:[%s636_s4 + $0x18] sm:$0xff] }
   0x7   :  { %448 = vmatpush3.msra.mxu1 %v284_v5  ;;  %455 = vmatprep.mubr.msk.f32.mxu1 %vm511_vm0, %v510_v1  ;;  %v34_v11 = vld [vmem:[%s634_s2] sm:$0xff]  ;;  %v200_v13 = vld [vmem:[%s636_s4 + $0x10] sm:$0xff]  ;;  %v199_v14 = vld [vmem:[%s636_s4 + $0x8] sm:$0xff] }
   0x8   :  { %449 = vmatprep.subr.mxu1 %v510_v1  ;;  %423 = vmatpush3.msra.mxu0 %v35_v10  ;;  %v198_v15 = vld [vmem:[%s636_s4] sm:$0xff] }
   0x9   :  { %450 = vmatpush3.msra.mxu1 %v283_v6  ;;  %424 = vmatprep.subr.mxu0 %v510_v1  ;;  %v402_v18 = vld [vmem:[%s639_s7] ss:$0 sm:$0xff]  ;;  %s512_s7 = smov [#allocation6]  }
   0xa   :  { %451 = vmatprep.subr.mxu1 %v510_v1  ;;  %425 = vmatpush3.msra.mxu0 %v34_v11  ;;  %v400_v30 = vld [vmem:[%s638_s6] ss:$0 sm:$0xff]  ;;  %s388_s14 = sshll.u32 %s512_s7, 4  ;;  %s389_s14 = int_to_ptr.vmem [resolvable:$true] %s388_s14 }
   0xb   :  { %452 = vmatpush3.msra.mxu1 %v282_v7  ;;  %v280_v9 = vld [vmem:[#allocation3] sm:$0x3]  ;;  %427 = vmatmul.mubr.msk.f32.vlgmr.msra.gmra.mxu0 %vm43_vm2, %v33_v3  ;;  %s466_s15 = scalar_lea.vmem %s389_s14, 32  ;;  %p471_p1 = scmp.lt.s32.totalorder %s389_s14, %s389_s14 }
   0xc   :  { %453 = vmatprep.subr.mxu1 %v510_v1  ;;  %436 = vmatprep.subr.mxu0 %v510_v1  ;;  %p467_p0 = scmp.ne.s32.totalorder %s389_s14, %s466_s15  ;;  %p472_p2 = scmp.lt.s32.totalorder %s466_s15, %s466_s15 }
   0xd   :  { %454 = vmatpush3.msra.mxu1 %v281_v8  ;;  %437 = vmatpush3.msra.mxu0 %v201_v12 }
   0xe   :  { %456 = vmatmul.mubr.msk.f32.vlgmr.msra.gmra.mxu1 %vm205_vm3, %v280_v9  ;;  %444 = vmatprep.mubr.msk.f32.mxu0 %vm511_vm0, %v510_v1  ;;  %p473_p3 = por %p472_p2, %p471_p1 }
   0xf   :  { %438 = vmatprep.subr.mxu0 %v510_v1 }
  0x10   :  { %439 = vmatpush3.msra.mxu0 %v200_v13  ;;  %p474_p4 = pnand %p473_p3, %p467_p0 }
  0x11   :  { %440 = vmatprep.subr.mxu0 %v510_v1 }
  0x12   :  { %441 = vmatpush3.msra.mxu0 %v199_v14 }
  0x13   :  { %442 = vmatprep.subr.mxu0 %v510_v1 }
  0x14   :  { %443 = vmatpush3.msra.mxu0 %v198_v15 }
  0x15   :  { %445 = vmatmul.mubr.msk.f32.vlgmr.msra.gmra.mxu0 %vm205_vm3, %v202_v4 }
  0xc6   :  { %v194_v16 = vpop.f32.mrf.mxu1 }
  0xc7   :  { %v195_v19 = vadd.f32 %v402_v18, %v194_v16 }
  0xc8   :  { %v435_v17 = vpop.f32.mrf.mxu1 }
  0xcb   :  { %v113_v29 = vpop.f32.mrf.mxu0 }
  0xcc   :  { %v114_v32 = vadd.f32 %v400_v30, %v113_v29 }
  0xcd   :  { %v428_v31 = vpop.f32.mrf.mxu0 }
  0xce   :  { %v354_v20 = vpop.f32.mrf.mxu1  ;;  %118 = vst.msk [vmem:[#allocation2] sm:$0x3] %vm117_vm1, %v114_v32 }
  0xcf   :  { %v355_v21 = vadd.f32 %v354_v20, %v195_v19 }
  0xd0   :  { %v457_v22 = vpop.f32.mrf.mxu1 }
  0xd1   :  { %v359_v23 = vsel %vm358_vm4, %v355_v21, -inf }
  0xd2   :  { %360 = vmax.xlane.f32.xlu0 %v359_v23 }
  0xd5   :  { %v275_v33 = vpop.f32.mrf.mxu0  ;;  %v204_v34 = vld [vmem:[#allocation2] sm:$0x3] }
  0xd6   :  { %v276_v36 = vadd.f32 %v275_v33, %v204_v34 }
  0xd7   :  { %v446_v35 = vpop.f32.mrf.mxu0 }
  0xd8   :  { %279 = vst.msk [vmem:[#allocation6] sm:$0x3] %vm117_vm1, %v276_v36 }
 0x15b   :  { %v361_v24 = vpop.xlane.xlu0 %360 }
 0x15c   :  { %v362_v25 = vsub.f32 %v355_v21, %v361_v24 }
 0x15e   :  { %v363_v26 = vmul.f32 1.442695, %v362_v25 }
 0x160   :  { %462 = vpow2.f32 %v363_v26 }
 0x16d   :  { %v463_v27 = vpop.eup %462 }
 0x16e   :  { %v365_v28 = vsel %vm358_vm4, %v463_v27, 0.0 }
 0x16f   :  { %366 = vadd.xlane.f32.xlu0 %v365_v28 }
 0x170   :  { %477 = shalt.err (!%p474_p4)
}
 0x171   :  { %391 = dma.vmem_to_hbm [thread:$0]  %s389_s14, 32, %s641_s9, [#allocation7]  }
 0x172   :  { %s513_s17 = smov [#allocation4]  }
 0x173   :  { %s378_s18 = sshll.u32 %s513_s17, 4  ;;  %s379_s18 = int_to_ptr.vmem [resolvable:$true] %s378_s18 }
 0x174   :  { %s486_s0 = scalar_lea.vmem %s379_s18, 32  ;;  %p491_p6 = scmp.lt.s32.totalorder %s379_s18, %s379_s18 }
 0x175   :  { %p487_p5 = scmp.ne.s32.totalorder %s379_s18, %s486_s0  ;;  %p492_p7 = scmp.lt.s32.totalorder %s486_s0, %s486_s0 }
 0x177   :  { %p493_p8 = por %p492_p7, %p491_p6 }
 0x179   :  { %p494_p9 = pnand %p493_p8, %p487_p5 }
 0x1f8   :  { %v367_v37 = vpop.xlane.xlu0 %366 }
 0x1f9   :  { %464 = vlog2.f32 %v367_v37 }
 0x206   :  { %v465_v38 = vpop.eup %464 }
 0x207   :  { %v369_v39 = vmul.f32 0.6931472, %v465_v38 }
 0x209   :  { %v370_v40 = vsub.f32 %v362_v25, %v369_v39 }
 0x20b   :  { %371 = vst.msk [vmem:[#allocation4] sm:$0x3] %vm358_vm4, %v370_v40 }
 0x20c   :  { %497 = shalt.err (!%p494_p9)
}
 0x20d   :  { %381 = dma.vmem_to_hbm [thread:$0]  %s379_s18, 32, %s640_s8, [#allocation5]  }
 0x20e   :  { %506 = dma.done.wait [#allocation5], 32  }
 0x20f   :  { %507 = vsyncadd [#allocation5], 4294967264 }
 0x210   :  { %508 = dma.done.wait [#allocation7], 32  }
 0x211   :  { %509 = vsyncadd [#allocation7], 4294967264 }
 0x212   :  { %398 = vsyncpa [#allocation5], 1 }
 0x213   :  { %399 = vsyncpa [#allocation7], 1 }

</bundles_post_ra>
